<compile_context>
chip_gen: v5e
topology: v5e:2x2
jax: 0.10.0
libtpu: 0.0.40
codegen_flags: <defaults>
</compile_context>

<pallas_src>
import functools

import jax
import jax.numpy as jnp
from jax.experimental import pallas as pl
from jax.experimental.pallas import tpu as pltpu


def resnext_block_kernel(x_ref, wri_ref, bri_ref, wgc_ref, t2_ref, w3_ref,
                         t3_ref, mask_ref, o_ref, *, cin, cout, cin_pad, wdim):
    lane = x_ref.shape[-1]
    x = x_ref[...]                                           # (Cin, LANE) bf16

    # ---- fused reduce-1x1 + identity-1x1 convs: one MXU matmul, f32 acc ----
    z = jnp.dot(wri_ref[...], x, preferred_element_type=jnp.float32)
    z = z + bri_ref[...]
    y1 = jnp.maximum(z[0:cin, :], 0.0)                       # relu(BN(reduce(x)))
    idp = z[cin_pad:cin_pad + cout, :]                       # BN(identity(x))

    # ---- grouped 3x3 conv, stride 1, pad 1 ----
    # 9 lane-rolled taps (XLU) multiplied by precomputed edge masks, stacked on
    # the sublane axis and contracted in a single K = 9*Cin MXU matmul; group
    # structure is encoded in the block-diagonal per-tap weights.
    taps = []
    tap = 0
    for oy in (-1, 0, 1):
        for ox in (-1, 0, 1):
            s = oy * wdim + ox
            if s == 0:
                taps.append(y1)
            else:
                shifted = pltpu.roll(y1, (-s) % lane, axis=1)
                taps.append(shifted * mask_ref[tap])         # (Cin,L) * (1,L)
            tap += 1
    s_cat = jnp.concatenate(taps, axis=0).astype(jnp.bfloat16)   # (9*Cin, LANE)
    y2 = jnp.dot(wgc_ref[...], s_cat, preferred_element_type=jnp.float32)
    y2 = jnp.maximum(y2 + t2_ref[...], 0.0)                  # relu(BN(group(y1)))

    # ---- expand 1x1 + BN, residual add, final ReLU ----
    y3 = jnp.dot(w3_ref[...], y2.astype(jnp.bfloat16),
                 preferred_element_type=jnp.float32)
    o_ref[...] = jnp.maximum(y3 + t3_ref[...] + idp, 0.0).astype(o_ref.dtype)


def _fold_bn_into_conv(w_oi, bias, bn_params, eps=1e-5):
    """Fold eval-mode BN into the conv: scale -> weight rows, shift -> bias."""
    gamma, beta, mean, var = bn_params
    inv = gamma / jnp.sqrt(var + eps)
    w_scaled = (w_oi * inv[:, None]).astype(jnp.float32)
    shift = ((bias - mean) * inv + beta).astype(jnp.float32)
    return w_scaled, shift


def _per_lane_vmem_bytes(cin, cout, cin_pad):
    """Conservative VMEM bytes per lane of the tile (I/O + kernel temporaries)."""
    io = 2 * (cin * 2 + cout * 4)            # double-buffered x (bf16) + out (f32)
    mask = 2 * 9 * 4                         # (9,1,L) f32 edge masks
    temps = (4 * ((cin_pad + cout) + cin + 2 * 9 * cin + cin + 2 * cout)
             + 2 * 9 * cin)                  # f32 temps + bf16 stacked taps
    return io + mask + temps


def _pick_images_per_tile(n, hw, per_lane_bytes, budget_bytes):
    max_imgs = max(1, budget_bytes // (per_lane_bytes * hw))
    if n >= 2:
        # keep >= 2 grid steps along the parallel axis (v7x has 2 TensorCores)
        max_imgs = min(max_imgs, max(1, n // 2))
    best = None
    for d in range(1, n + 1):
        if n % d == 0 and d <= max_imgs and (d * hw) % 128 == 0:
            best = d
    if best is None:
        best = n        # full-extent lane block is always layout-legal
    return best


def resnext_block_forward(x_nchw, params, n_groups):
    N, Cin, H, W = x_nchw.shape
    Cout = params["w_expand"].shape[0]
    Cg = Cin // n_groups
    HW = H * W
    cin_pad = ((Cin + 7) // 8) * 8     # identity rows start on a sublane boundary

    # --- fold eval-mode BN into conv weights / biases (f32) ---
    w1, t1 = _fold_bn_into_conv(params["w_reduce"][:, :, 0, 0],
                                params["b_reduce"], params["bn_reduce"])
    w3, t3 = _fold_bn_into_conv(params["w_expand"][:, :, 0, 0],
                                params["b_expand"], params["bn_expand"])
    wid, tid = _fold_bn_into_conv(params["w_id"][:, :, 0, 0],
                                  params["b_id"], params["bn_id"])

    gamma, beta, mean, var = params["bn_group"]
    inv2 = gamma / jnp.sqrt(var + 1e-5)
    t2 = ((params["b_group"] - mean) * inv2 + beta).astype(jnp.float32)
    wg_scaled = params["w_group"] * inv2[:, None, None, None]   # (Cin, Cg, 3, 3)

    # Grouped 3x3 weight -> per-tap block-diagonal dense -> single (Cin, 9*Cin).
    wg_full = jnp.zeros((3, 3, Cin, Cin), jnp.float32)
    for g in range(n_groups):
        blk = wg_scaled[g * Cg:(g + 1) * Cg]                    # (Cg_out, Cg_in, 3, 3)
        blk = jnp.transpose(blk, (2, 3, 0, 1))                  # (3, 3, Cg_out, Cg_in)
        wg_full = wg_full.at[:, :, g * Cg:(g + 1) * Cg,
                             g * Cg:(g + 1) * Cg].set(blk)
    wg_taps = wg_full.reshape(9, Cin, Cin)
    wg_cat = jnp.transpose(wg_taps, (1, 0, 2)).reshape(Cin, 9 * Cin)

    # Fuse reduce-1x1 and identity-1x1 into one left-multiplied weight.
    w_ri = jnp.zeros((cin_pad + Cout, Cin), jnp.float32)
    w_ri = w_ri.at[:Cin, :].set(w1).at[cin_pad:, :].set(wid)
    b_ri = jnp.zeros((cin_pad + Cout, 1), jnp.float32)
    b_ri = b_ri.at[:Cin, 0].set(t1).at[cin_pad:, 0].set(tid)

    # bf16 matmul operands; biases and accumulation stay f32.
    w_ri_bf = w_ri.astype(jnp.bfloat16)
    wg_cat_bf = wg_cat.astype(jnp.bfloat16)
    w3_bf = w3.astype(jnp.bfloat16)
    t2c = t2.reshape(Cin, 1)
    t3c = t3.reshape(Cout, 1)

    # Lane-flattened layout: channels on sublanes, N*H*W on lanes (one transpose).
    x_flat = (x_nchw.reshape(N, Cin, HW).transpose(1, 0, 2)
              .reshape(Cin, N * HW).astype(jnp.bfloat16))

    per_lane = _per_lane_vmem_bytes(Cin, Cout, cin_pad)
    imgs_per_tile = _pick_images_per_tile(N, HW, per_lane, 18 * 1024 * 1024)
    lane_tile = imgs_per_tile * HW
    grid = (N * HW) // lane_tile

    # Precomputed 3x3-tap edge masks, repeated per image within a lane tile.
    p = jnp.arange(HW)
    row, col = p // W, p % W
    mask_rows = []
    for oy in (-1, 0, 1):
        for ox in (-1, 0, 1):
            valid = ((row + oy >= 0) & (row + oy < H)
                     & (col + ox >= 0) & (col + ox < W))
            mask_rows.append(valid.astype(jnp.float32))
    mask_tile = jnp.tile(jnp.stack(mask_rows).reshape(9, 1, HW),
                         (1, 1, imgs_per_tile))                  # (9, 1, lane_tile)

    kernel = functools.partial(resnext_block_kernel, cin=Cin, cout=Cout,
                               cin_pad=cin_pad, wdim=W)

    weight_bytes = int(2 * (w_ri_bf.size + wg_cat_bf.size + w3_bf.size)
                       + 4 * (b_ri.size + t2c.size + t3c.size + mask_tile.size))
    flops = 2 * N * HW * (Cin * (cin_pad + Cout) + 9 * Cin * Cin + Cin * Cout)
    io_bytes = N * HW * (Cin * 2 + Cout * 4)
    # <= 28 MiB scoped VMEM so the same kernel compiles on v7x (64 MiB physical).
    vmem_limit = int(min(28 * 1024 * 1024,
                         max(8 * 1024 * 1024,
                             per_lane * lane_tile + weight_bytes + (2 << 20))))

    out_flat = pl.pallas_call(
        kernel,
        out_shape=jax.ShapeDtypeStruct((Cout, N * HW), x_nchw.dtype),
        grid_spec=pltpu.PrefetchScalarGridSpec(
            num_scalar_prefetch=0,
            grid=(grid,),                          # lane tiles: pipelined + megacore
            in_specs=[
                pl.BlockSpec((Cin, lane_tile), lambda t: (0, t)),
                pl.BlockSpec((cin_pad + Cout, Cin), lambda t: (0, 0)),
                pl.BlockSpec((cin_pad + Cout, 1), lambda t: (0, 0)),
                pl.BlockSpec((Cin, 9 * Cin), lambda t: (0, 0)),
                pl.BlockSpec((Cin, 1), lambda t: (0, 0)),
                pl.BlockSpec((Cout, Cin), lambda t: (0, 0)),
                pl.BlockSpec((Cout, 1), lambda t: (0, 0)),
                pl.BlockSpec((9, 1, lane_tile), lambda t: (0, 0, 0)),
            ],
            out_specs=pl.BlockSpec((Cout, lane_tile), lambda t: (0, t)),
        ),
        compiler_params=pltpu.CompilerParams(
            dimension_semantics=("parallel",),
            vmem_limit_bytes=vmem_limit,
        ),
        cost_estimate=pl.CostEstimate(flops=int(flops), transcendentals=0,
                                      bytes_accessed=int(io_bytes + weight_bytes)),
    )(x_flat, w_ri_bf, b_ri, wg_cat_bf, t2c, w3_bf, t3c, mask_tile)

    return (out_flat.reshape(Cout, N, HW).transpose(1, 0, 2)
            .reshape(N, Cout, H, W))


# ---------------------------- pure-JAX reference ----------------------------

def _conv(x, w, b, stride=1, padding=0, groups=1):
    out = jax.lax.conv_general_dilated(
        x, w, window_strides=(stride, stride),
        padding=[(padding, padding), (padding, padding)],
        dimension_numbers=("NCHW", "OIHW", "NCHW"),
        feature_group_count=groups)
    return out + b.reshape(1, -1, 1, 1)


def _bn(x, bn_params, eps=1e-5):
    gamma, beta, mean, var = (p.reshape(1, -1, 1, 1) for p in bn_params)
    return (x - mean) / jnp.sqrt(var + eps) * gamma + beta


def reference_forward(x, params, n_groups):
    y = jax.nn.relu(_bn(_conv(x, params["w_reduce"], params["b_reduce"]),
                        params["bn_reduce"]))
    y = jax.nn.relu(_bn(_conv(y, params["w_group"], params["b_group"],
                              padding=1, groups=n_groups),
                        params["bn_group"]))
    y = _bn(_conv(y, params["w_expand"], params["b_expand"]), params["bn_expand"])
    idp = _bn(_conv(x, params["w_id"], params["b_id"]), params["bn_id"])
    return jax.nn.relu(y + idp)


# ---------------------------------- main ------------------------------------

def make_params(key, in_ch, out_ch, n_groups):
    ks = jax.random.split(key, 16)
    cg = in_ch // n_groups

    def bn(k, c):
        kg, kb, km, kv = jax.random.split(k, 4)
        return (jax.random.normal(kg, (c,), jnp.float32) * 0.1 + 1.0,
                jax.random.normal(kb, (c,), jnp.float32) * 0.1,
                jax.random.normal(km, (c,), jnp.float32) * 0.1,
                jax.random.uniform(kv, (c,), jnp.float32, 0.5, 1.5))

    return {
        "w_reduce": jax.random.normal(ks[0], (in_ch, in_ch, 1, 1), jnp.float32) * 0.5,
        "b_reduce": jax.random.normal(ks[1], (in_ch,), jnp.float32) * 0.1,
        "bn_reduce": bn(ks[2], in_ch),
        "w_group": jax.random.normal(ks[3], (in_ch, cg, 3, 3), jnp.float32) * 0.3,
        "b_group": jax.random.normal(ks[4], (in_ch,), jnp.float32) * 0.1,
        "bn_group": bn(ks[5], in_ch),
        "w_expand": jax.random.normal(ks[6], (out_ch, in_ch, 1, 1), jnp.float32) * 0.5,
        "b_expand": jax.random.normal(ks[7], (out_ch,), jnp.float32) * 0.1,
        "bn_expand": bn(ks[8], out_ch),
        "w_id": jax.random.normal(ks[9], (out_ch, in_ch, 1, 1), jnp.float32) * 0.5,
        "b_id": jax.random.normal(ks[10], (out_ch,), jnp.float32) * 0.1,
        "bn_id": bn(ks[11], out_ch),
    }


if __name__ == "__main__":
    N, IN_CH, OUT_CH, H, W, GROUPS = 2, 4, 8, 16, 16, 2

    key = jax.random.PRNGKey(0)
    kx, kp = jax.random.split(key)
    x = jax.random.normal(kx, (N, IN_CH, H, W), jnp.float32)
    params = make_params(kp, IN_CH, OUT_CH, GROUPS)

    out = jax.block_until_ready(resnext_block_forward(x, params, GROUPS))
    ref = jax.block_until_ready(reference_forward(x, params, GROUPS))

    assert out.shape == (N, OUT_CH, H, W), out.shape
    err = float(jnp.max(jnp.abs(out - ref)))
    # bf16 matmul operands (f32 accumulation): loosened tolerance vs pure-f32.
    assert jnp.allclose(out, ref, atol=1e-1, rtol=5e-2), err
    print("KERNEL_OK")
</pallas_src>

<mosaic_0001>
module attributes {stable_mosaic.version = 11 : i64} {
  func.func @resnext_block_kernel(%arg0: i32, %arg1: memref<4x256xbf16, #tpu.memory_space<vmem>>, %arg2: memref<16x4xbf16, #tpu.memory_space<vmem>>, %arg3: memref<16x1xf32, #tpu.memory_space<vmem>>, %arg4: memref<4x36xbf16, #tpu.memory_space<vmem>>, %arg5: memref<4x1xf32, #tpu.memory_space<vmem>>, %arg6: memref<8x4xbf16, #tpu.memory_space<vmem>>, %arg7: memref<8x1xf32, #tpu.memory_space<vmem>>, %arg8: memref<9x1x256xf32, #tpu.memory_space<vmem>>, %arg9: memref<8x256xf32, #tpu.memory_space<vmem>>) attributes {dimension_semantics = [#tpu.dimension_semantics<parallel>], iteration_bounds = array<i64: 2>, scalar_prefetch = 0 : i64, scratch_operands = 0 : i64, tpu.core_type = #tpu.core_type<tc>, window_params = [{transform_indices = @transform_0, window_bounds = array<i64: 4, 256>}, {pipeline_mode = #tpu.pipeline_mode<synchronous>, transform_indices = @transform_1, window_bounds = array<i64: 16, 4>}, {pipeline_mode = #tpu.pipeline_mode<synchronous>, transform_indices = @transform_2, window_bounds = array<i64: 16, 1>}, {pipeline_mode = #tpu.pipeline_mode<synchronous>, transform_indices = @transform_3, window_bounds = array<i64: 4, 36>}, {pipeline_mode = #tpu.pipeline_mode<synchronous>, transform_indices = @transform_4, window_bounds = array<i64: 4, 1>}, {pipeline_mode = #tpu.pipeline_mode<synchronous>, transform_indices = @transform_5, window_bounds = array<i64: 8, 4>}, {pipeline_mode = #tpu.pipeline_mode<synchronous>, transform_indices = @transform_6, window_bounds = array<i64: 8, 1>}, {pipeline_mode = #tpu.pipeline_mode<synchronous>, transform_indices = @transform_7, window_bounds = array<i64: 9, 1, 256>}, {transform_indices = @transform_8, window_bounds = array<i64: 8, 256>}]} {
    %c0 = arith.constant 0 : index
    %c0_0 = arith.constant 0 : index
    %0 = vector.load %arg1[%c0, %c0_0] : memref<4x256xbf16, #tpu.memory_space<vmem>>, vector<4x256xbf16>
    %c0_1 = arith.constant 0 : index
    %c0_2 = arith.constant 0 : index
    %1 = vector.load %arg2[%c0_1, %c0_2] : memref<16x4xbf16, #tpu.memory_space<vmem>>, vector<16x4xbf16>
    %cst = arith.constant dense<0.000000e+00> : vector<16x256xf32>
    %2 = tpu.matmul %1, %0, %cst {dimension_numbers = #tpu.dot_dimension_numbers<[1], [0], [0], [1], [0, 0, 1, 1], [], []>} : vector<16x4xbf16>, vector<4x256xbf16>, vector<16x256xf32> -> vector<16x256xf32>
    %c0_3 = arith.constant 0 : index
    %c0_4 = arith.constant 0 : index
    %3 = vector.load %arg3[%c0_3, %c0_4] : memref<16x1xf32, #tpu.memory_space<vmem>>, vector<16x1xf32>
    %4 = vector.broadcast %3 : vector<16x1xf32> to vector<16x256xf32>
    %5 = arith.addf %2, %4 : vector<16x256xf32>
    %6 = vector.extract_strided_slice %5 {offsets = [0, 0], sizes = [4, 256], strides = [1, 1]} : vector<16x256xf32> to vector<4x256xf32>
    %cst_5 = arith.constant 0.000000e+00 : f32
    %7 = vector.broadcast %cst_5 : f32 to vector<4x256xf32>
    %8 = arith.maximumf %6, %7 : vector<4x256xf32>
    %9 = vector.extract_strided_slice %5 {offsets = [8, 0], sizes = [8, 256], strides = [1, 1]} : vector<16x256xf32> to vector<8x256xf32>
    %c17_i32 = arith.constant 17 : i32
    %10 = tpu.dynamic_rotate %8 by %c17_i32 dim 1 : vector<4x256xf32>, i32 -> vector<4x256xf32>
    %c0_6 = arith.constant 0 : index
    %c0_7 = arith.constant 0 : index
    %c0_8 = arith.constant 0 : index
    %11 = vector.load %arg8[%c0_6, %c0_7, %c0_8] : memref<9x1x256xf32, #tpu.memory_space<vmem>>, vector<1x1x256xf32>
    %12 = vector.shape_cast %11 : vector<1x1x256xf32> to vector<1x256xf32>
    %13 = vector.broadcast %12 : vector<1x256xf32> to vector<4x256xf32>
    %14 = arith.mulf %10, %13 : vector<4x256xf32>
    %c16_i32 = arith.constant 16 : i32
    %15 = tpu.dynamic_rotate %8 by %c16_i32 dim 1 : vector<4x256xf32>, i32 -> vector<4x256xf32>
    %c1 = arith.constant 1 : index
    %c0_9 = arith.constant 0 : index
    %c0_10 = arith.constant 0 : index
    %16 = vector.load %arg8[%c1, %c0_9, %c0_10] : memref<9x1x256xf32, #tpu.memory_space<vmem>>, vector<1x1x256xf32>
    %17 = vector.shape_cast %16 : vector<1x1x256xf32> to vector<1x256xf32>
    %18 = vector.broadcast %17 : vector<1x256xf32> to vector<4x256xf32>
    %19 = arith.mulf %15, %18 : vector<4x256xf32>
    %c15_i32 = arith.constant 15 : i32
    %20 = tpu.dynamic_rotate %8 by %c15_i32 dim 1 : vector<4x256xf32>, i32 -> vector<4x256xf32>
    %c2 = arith.constant 2 : index
    %c0_11 = arith.constant 0 : index
    %c0_12 = arith.constant 0 : index
    %21 = vector.load %arg8[%c2, %c0_11, %c0_12] : memref<9x1x256xf32, #tpu.memory_space<vmem>>, vector<1x1x256xf32>
    %22 = vector.shape_cast %21 : vector<1x1x256xf32> to vector<1x256xf32>
    %23 = vector.broadcast %22 : vector<1x256xf32> to vector<4x256xf32>
    %24 = arith.mulf %20, %23 : vector<4x256xf32>
    %c1_i32 = arith.constant 1 : i32
    %25 = tpu.dynamic_rotate %8 by %c1_i32 dim 1 : vector<4x256xf32>, i32 -> vector<4x256xf32>
    %c3 = arith.constant 3 : index
    %c0_13 = arith.constant 0 : index
    %c0_14 = arith.constant 0 : index
    %26 = vector.load %arg8[%c3, %c0_13, %c0_14] : memref<9x1x256xf32, #tpu.memory_space<vmem>>, vector<1x1x256xf32>
    %27 = vector.shape_cast %26 : vector<1x1x256xf32> to vector<1x256xf32>
    %28 = vector.broadcast %27 : vector<1x256xf32> to vector<4x256xf32>
    %29 = arith.mulf %25, %28 : vector<4x256xf32>
    %c255_i32 = arith.constant 255 : i32
    %30 = tpu.dynamic_rotate %8 by %c255_i32 dim 1 : vector<4x256xf32>, i32 -> vector<4x256xf32>
    %c5 = arith.constant 5 : index
    %c0_15 = arith.constant 0 : index
    %c0_16 = arith.constant 0 : index
    %31 = vector.load %arg8[%c5, %c0_15, %c0_16] : memref<9x1x256xf32, #tpu.memory_space<vmem>>, vector<1x1x256xf32>
    %32 = vector.shape_cast %31 : vector<1x1x256xf32> to vector<1x256xf32>
    %33 = vector.broadcast %32 : vector<1x256xf32> to vector<4x256xf32>
    %34 = arith.mulf %30, %33 : vector<4x256xf32>
    %c241_i32 = arith.constant 241 : i32
    %35 = tpu.dynamic_rotate %8 by %c241_i32 dim 1 : vector<4x256xf32>, i32 -> vector<4x256xf32>
    %c6 = arith.constant 6 : index
    %c0_17 = arith.constant 0 : index
    %c0_18 = arith.constant 0 : index
    %36 = vector.load %arg8[%c6, %c0_17, %c0_18] : memref<9x1x256xf32, #tpu.memory_space<vmem>>, vector<1x1x256xf32>
    %37 = vector.shape_cast %36 : vector<1x1x256xf32> to vector<1x256xf32>
    %38 = vector.broadcast %37 : vector<1x256xf32> to vector<4x256xf32>
    %39 = arith.mulf %35, %38 : vector<4x256xf32>
    %c240_i32 = arith.constant 240 : i32
    %40 = tpu.dynamic_rotate %8 by %c240_i32 dim 1 : vector<4x256xf32>, i32 -> vector<4x256xf32>
    %c7 = arith.constant 7 : index
    %c0_19 = arith.constant 0 : index
    %c0_20 = arith.constant 0 : index
    %41 = vector.load %arg8[%c7, %c0_19, %c0_20] : memref<9x1x256xf32, #tpu.memory_space<vmem>>, vector<1x1x256xf32>
    %42 = vector.shape_cast %41 : vector<1x1x256xf32> to vector<1x256xf32>
    %43 = vector.broadcast %42 : vector<1x256xf32> to vector<4x256xf32>
    %44 = arith.mulf %40, %43 : vector<4x256xf32>
    %c239_i32 = arith.constant 239 : i32
    %45 = tpu.dynamic_rotate %8 by %c239_i32 dim 1 : vector<4x256xf32>, i32 -> vector<4x256xf32>
    %c8 = arith.constant 8 : index
    %c0_21 = arith.constant 0 : index
    %c0_22 = arith.constant 0 : index
    %46 = vector.load %arg8[%c8, %c0_21, %c0_22] : memref<9x1x256xf32, #tpu.memory_space<vmem>>, vector<1x1x256xf32>
    %47 = vector.shape_cast %46 : vector<1x1x256xf32> to vector<1x256xf32>
    %48 = vector.broadcast %47 : vector<1x256xf32> to vector<4x256xf32>
    %49 = arith.mulf %45, %48 : vector<4x256xf32>
    %50 = tpu.concatenate %14, %19, %24, %29, %8, %34, %39, %44, %49 in 0 : vector<4x256xf32>, vector<4x256xf32>, vector<4x256xf32>, vector<4x256xf32>, vector<4x256xf32>, vector<4x256xf32>, vector<4x256xf32>, vector<4x256xf32>, vector<4x256xf32> -> vector<36x256xf32>
    %51 = arith.truncf %50 : vector<36x256xf32> to vector<36x256xbf16>
    %c0_23 = arith.constant 0 : index
    %c0_24 = arith.constant 0 : index
    %52 = vector.load %arg4[%c0_23, %c0_24] : memref<4x36xbf16, #tpu.memory_space<vmem>>, vector<4x36xbf16>
    %cst_25 = arith.constant dense<0.000000e+00> : vector<4x256xf32>
    %53 = tpu.matmul %52, %51, %cst_25 {dimension_numbers = #tpu.dot_dimension_numbers<[1], [0], [0], [1], [0, 0, 1, 1], [], []>} : vector<4x36xbf16>, vector<36x256xbf16>, vector<4x256xf32> -> vector<4x256xf32>
    %c0_26 = arith.constant 0 : index
    %c0_27 = arith.constant 0 : index
    %54 = vector.load %arg5[%c0_26, %c0_27] : memref<4x1xf32, #tpu.memory_space<vmem>>, vector<4x1xf32>
    %55 = vector.broadcast %54 : vector<4x1xf32> to vector<4x256xf32>
    %56 = arith.addf %53, %55 : vector<4x256xf32>
    %cst_28 = arith.constant 0.000000e+00 : f32
    %57 = vector.broadcast %cst_28 : f32 to vector<4x256xf32>
    %58 = arith.maximumf %56, %57 : vector<4x256xf32>
    %c0_29 = arith.constant 0 : index
    %c0_30 = arith.constant 0 : index
    %59 = vector.load %arg6[%c0_29, %c0_30] : memref<8x4xbf16, #tpu.memory_space<vmem>>, vector<8x4xbf16>
    %60 = arith.truncf %58 : vector<4x256xf32> to vector<4x256xbf16>
    %cst_31 = arith.constant dense<0.000000e+00> : vector<8x256xf32>
    %61 = tpu.matmul %59, %60, %cst_31 {dimension_numbers = #tpu.dot_dimension_numbers<[1], [0], [0], [1], [0, 0, 1, 1], [], []>} : vector<8x4xbf16>, vector<4x256xbf16>, vector<8x256xf32> -> vector<8x256xf32>
    %c0_32 = arith.constant 0 : index
    %c0_33 = arith.constant 0 : index
    %62 = vector.load %arg7[%c0_32, %c0_33] : memref<8x1xf32, #tpu.memory_space<vmem>>, vector<8x1xf32>
    %63 = vector.broadcast %62 : vector<8x1xf32> to vector<8x256xf32>
    %64 = arith.addf %61, %63 : vector<8x256xf32>
    %65 = arith.addf %64, %9 : vector<8x256xf32>
    %cst_34 = arith.constant 0.000000e+00 : f32
    %66 = vector.broadcast %cst_34 : f32 to vector<8x256xf32>
    %67 = arith.maximumf %65, %66 : vector<8x256xf32>
    %c0_35 = arith.constant 0 : index
    %c0_36 = arith.constant 0 : index
    %68 = vector.load %arg9[%c0_35, %c0_36] : memref<8x256xf32, #tpu.memory_space<vmem>>, vector<8x256xf32>
    tpu.vector_store %arg9[%c0_35, %c0_36], %67 {strides = array<i32>} : memref<8x256xf32, #tpu.memory_space<vmem>>, vector<8x256xf32>,
    return
  }
  func.func @transform_0(%arg0: i32) -> (i32, i32) {
    %c0_i32 = arith.constant 0 : i32
    %c0_i32_0 = arith.constant 0 : i32
    return %c0_i32, %arg0 : i32, i32
  }
  func.func @transform_1(%arg0: i32) -> (i32, i32) {
    %c0_i32 = arith.constant 0 : i32
    %c0_i32_0 = arith.constant 0 : i32
    %c0_i32_1 = arith.constant 0 : i32
    return %c0_i32, %c0_i32_0 : i32, i32
  }
  func.func @transform_2(%arg0: i32) -> (i32, i32) {
    %c0_i32 = arith.constant 0 : i32
    %c0_i32_0 = arith.constant 0 : i32
    %c0_i32_1 = arith.constant 0 : i32
    return %c0_i32, %c0_i32_0 : i32, i32
  }
  func.func @transform_3(%arg0: i32) -> (i32, i32) {
    %c0_i32 = arith.constant 0 : i32
    %c0_i32_0 = arith.constant 0 : i32
    %c0_i32_1 = arith.constant 0 : i32
    return %c0_i32, %c0_i32_0 : i32, i32
  }
  func.func @transform_4(%arg0: i32) -> (i32, i32) {
    %c0_i32 = arith.constant 0 : i32
    %c0_i32_0 = arith.constant 0 : i32
    %c0_i32_1 = arith.constant 0 : i32
    return %c0_i32, %c0_i32_0 : i32, i32
  }
  func.func @transform_5(%arg0: i32) -> (i32, i32) {
    %c0_i32 = arith.constant 0 : i32
    %c0_i32_0 = arith.constant 0 : i32
    %c0_i32_1 = arith.constant 0 : i32
    return %c0_i32, %c0_i32_0 : i32, i32
  }
  func.func @transform_6(%arg0: i32) -> (i32, i32) {
    %c0_i32 = arith.constant 0 : i32
    %c0_i32_0 = arith.constant 0 : i32
    %c0_i32_1 = arith.constant 0 : i32
    return %c0_i32, %c0_i32_0 : i32, i32
  }
  func.func @transform_7(%arg0: i32) -> (i32, i32, i32) {
    %c0_i32 = arith.constant 0 : i32
    %c0_i32_0 = arith.constant 0 : i32
    %c0_i32_1 = arith.constant 0 : i32
    %c0_i32_2 = arith.constant 0 : i32
    return %c0_i32, %c0_i32_0, %c0_i32_1 : i32, i32, i32
  }
  func.func @transform_8(%arg0: i32) -> (i32, i32) {
    %c0_i32 = arith.constant 0 : i32
    %c0_i32_0 = arith.constant 0 : i32
    return %c0_i32, %arg0 : i32, i32
  }
}

</mosaic_0001>

<bundles_post_ra>
// kernel: tpu_custom_call.1
= control target key start
LH: loop header
LB: loop body
LE: loop exit
PB: predicated region body
PF: predicated region fallthrough
CT: control target
= control target key end

     0   :  { %13 = vsyncpa [#allocation3], 0  ;;  %s1093_s0 = inlined_call_operand.vmem [shape: bf16[4,512], index: 0, kind: input, shape index: {}]   ;;  %s1094_s1 = inlined_call_operand.vmem [shape: bf16[16,4], index: 1, kind: input, shape index: {}]   ;;  %s1095_s2 = inlined_call_operand.vmem [shape: f32[16,1], index: 2, kind: input, shape index: {}]   ;;  %s1096_s3 = inlined_call_operand.vmem [shape: bf16[4,36], index: 3, kind: input, shape index: {}]   ;;  %s1097_s4 = inlined_call_operand.vmem [shape: f32[4,1], index: 4, kind: input, shape index: {}]   ;;  %s1098_s5 = inlined_call_operand.vmem [shape: bf16[8,4], index: 5, kind: input, shape index: {}]   ;;  %s1099_s6 = inlined_call_operand.vmem [shape: f32[8,1], index: 6, kind: input, shape index: {}]   ;;  %s1100_s7 = inlined_call_operand.vmem [shape: f32[9,1,256], index: 7, kind: input, shape index: {}]   ;;  %s1101_s8 = inlined_call_operand.hbm [shape: f32[8,512], index: 8, kind: output, shape index: {}]  }
   0x1   :  { %15 = vsyncpa [#allocation3 + $0x1], 0  ;;  %s910_s27 = smov 0   ;;  %s912_s28 = smov 0  }
   0x2   :  { %s914_s29 = smov 0   ;;  %s916_s30 = smov 0  }
   0x3 LB: > { %s931_s9 = sadd.s32 4294967295, %s854_s30   ;;  %s710_s10 = sadd.s32 4294967294, %s854_s30   ;;  %s854_s30 = sphi %s916_s30, %s1107_s30   ;;  %s850_s29 = sphi %s914_s29, %s1106_s29   ;;  %s846_s28 = sphi %s912_s28, %s1105_s28   ;;  %s842_s27 = sphi %s910_s27, %s1104_s27  }
   0x4   : > { %s935_s11 = sadd.s32 1, %s854_s30   ;;  %s201_s12 = sadd.s32 1, %s850_s29 }
   0x5   : > { %s198_s13 = ssub.s32 %s854_s30, %s935_s11  ;;  %p211_p0 = scmp.ne.s32.totalorder %s850_s29, %s846_s28 }
   0x6   : > { %p199_p1 = scmp.eq.s32.totalorder %s198_s13, 0  ;;  %p212_p2 = scmp.eq.s32.totalorder %s931_s9, 1 }
   0x7   : > { %p217_p3 = scmp.ne.s32.totalorder %s846_s28, %s842_s27  ;;  %p218_p4 = scmp.eq.s32.totalorder %s710_s10, 1 }
   0x8   : > { %s946_s14 = scalar_select %p199_p1, %s850_s29, %s201_s12  }
   0x9   : > { %p948_p5 = por %p212_p2, %p211_p0  ;;  %p952_p6 = por %p218_p4, %p217_p3 }
   0xa   : > { %p713_p7 = scmp.ge.s32.totalorder %s854_s30, 1  ;;  %p266_p8 = scmp.lt.s32.totalorder %s854_s30, 3 }
   0xc   : > { %p267_p9 = pnand %p713_p7, %p266_p8 }
   0xd   : > { %s715_s17 = sshll.u32 (!%p267_p9), %s931_s9, 1  ;;  %s857_s26 = smov (!%p267_p9), 127  }
   0xe   : > { %270 = sbr.rel (%p267_p9) target bundleno = 607 (0x25f), region = 52  ;;  %p301_p10 = scmp.lt.s32.totalorder (!%p267_p9), %s715_s17, 3 }
   0xf   : > { %s858_s10 = smov (!%p267_p9), 111   ;;  %s859_s12 = smov (!%p267_p9), 112  }
  0x10   : > { %s860_s13 = smov (!%p267_p9), 113   ;;  %s862_s18 = smov (!%p267_p9), 1  }
  0x11   : > { %s863_s19 = smov (!%p267_p9), 17   ;;  %s297_s21 = sand.u32 (!%p267_p9), 1, %s846_s28  }
  0x12   : > { %s714_s22 = sshll.u32 (!%p267_p9), %s297_s21, 4 }
  0x13   : > { %v311_v0 = vld [vmem:[%s1095_s2] sm:$0xff]  ;;  %v856_v1 = vmov 0   ;;  %s1109_s17 = smov (!%p301_p10, %s715_s17), 3  ;;  %vm336_vm0 = vcmask 1041408   ;;  %vm332_vm1 = vcmask 31744   ;;  %v312_v15 = vld [vmem:[%s1095_s2 + $0x8] sm:$0xff]  ;;  %v375_v16 = vlaneseq }
  0x14   : > { %789 = vset.pattern.permute.xlu0 %v856_v1  ;;  %790 = vset.pattern.permute.xlu2 %v856_v1  ;;  %s716_s20 = sshll.u32 %s1109_s17, 1  ;;  %v739_v7 = vld [vmem:[%s1094_s1] sm:$0xff]  ;;  %s861_s17 = smov 16   ;;  %v729_v19 = vld [vmem:[%s1100_s7 + $0x10] sm:$0x3]  ;;  %vm524_vm6 = vcmask 1043456  }
  0x15   : > { %315 = vperm.xlu0 %789, %v311_v0   ;;  %791 = vset.pattern.permute.xlu1 %v856_v1  ;;  %s304_s23 = scalar_lea.vmem %s1093_s0, %s716_s20  ;;  %s864_s20 = smov 15   ;;  %v995_v17 = vand.u32 127, %v375_v16  ;;  %v494_v20 = vperm.slane %v729_v19, 0  ;;  %v495_v21 = vperm.slane %v729_v19, 1  ;;  %v726_v30 = vld [vmem:[%s1100_s7 + $0xa] sm:$0x3] }
  0x16   : > { %v308_v2 = vld [vmem:[%s304_s23] sm:$0xf]  ;;  %v728_v34 = vld [vmem:[%s1100_s7 + $0xe] sm:$0x3]  ;;  %v446_v35 = vperm.slane %v726_v30, 0  ;;  %v447_v36 = vperm.slane %v726_v30, 1 }
  0x17   : > { %329 = vst [vmem:[#allocation1] ss:$4 sm:$0xff] %v308_v2  ;;  %vm488_vm2 = vcmp.lt.s32.totalorder %v995_v17, 111  ;;  %vm440_vm3 = vcmp.lt.s32.totalorder %v995_v17, 127  ;;  %vm472_vm4 = vcmp.lt.s32.totalorder %v995_v17, 112  ;;  %v478_v41 = vperm.slane %v728_v34, 0 }
  0x18   : > { %v479_v42 = vperm.slane %v728_v34, 1  ;;  %v727_v45 = vld [vmem:[%s1100_s7 + $0xc] sm:$0x3]  ;;  %vm456_vm5 = vcmp.lt.s32.totalorder %v995_v17, 113  ;;  %v540_v62 = vld [vmem:[%s1097_s4] sm:$0xf] }
  0x19   : > { %v462_v50 = vperm.slane %v727_v45, 0  ;;  %v463_v51 = vperm.slane %v727_v45, 1  ;;  %vm392_vm7 = vcmp.lt.s32.totalorder %v995_v17, 16  ;;  %vm424_vm8 = vcmp.lt.s32.totalorder %v995_v17, 1  ;;  %s740_s23 = sshll.u32 %s931_s9, 4  ;;  %s635_s9 = scalar_lea.sflag [#allocation3], %s297_s21 }
  0x1a   : > { %vm377_vm9 = vcmp.lt.s32.totalorder %v995_v17, 17  ;;  %vm408_vm10 = vcmp.lt.s32.totalorder %v995_v17, 15  ;;  %v539_v17 = vld [vmem:[%s1096_s3] sm:$0x3]  ;;  %vm546_vm11 = vcmask 293888  }
  0x1e   : > { %v330_v3 = vld.sshfl [vmem:[#allocation1] sm:$0xff pattern:$0x73625140]  ;;  %v331_v4 = vld.sshfl [vmem:[#allocation1 + $0x8] sm:$0xff pattern:$0x73625140] }
  0x1f   : > { %v337_v5 = vsel %vm336_vm0, %v330_v3, 0  ;;  %v339_v6 = vsel %vm336_vm0, %v331_v4, 0 }
  0x20   : > { %348 = vmatpush.bf16.msra.mxu0 %v337_v5  ;;  %362 = vmatpush.bf16.msra.mxu1 %v339_v6 }
  0x23   : > { %721 = vmatmul.msk.bf16.vlgmr.msra.gmra.mxu0 %vm332_vm1, %v739_v7  ;;  %722 = vmatmul.msk.bf16.vlgmr.msra.gmra.mxu1 %vm332_vm1, %v739_v7 }
  0x87   : > { %v316_v8 = vpop.permute.xlu0 %315 }
  0xa0   : > { %v350_v9 = vpop.f32.mrf.mxu0  ;;  %v364_v10 = vpop.f32.mrf.mxu1 }
  0xa1   : > { %v351_v11 = vadd.f32 %v350_v9, %v316_v8  ;;  %v365_v12 = vadd.f32 %v364_v10, %v316_v8  ;;  %v723_v8 = vld [vmem:[%s1100_s7 + $0x2] sm:$0x3]  ;;  %v725_v9 = vld [vmem:[%s1100_s7 + $0x6] sm:$0x3] }
  0xa2   : > { %v431_v19 = vperm.slane %v725_v9, 1 }
  0xa3   : > { %v972_v13 = vmax.f32 %v351_v11, 0.0  ;;  %v974_v14 = vmax.f32 %v365_v12, 0.0  ;;  %v398_v12 = vperm.slane %v723_v8, 0 }
  0xa5   : > { %438 = vrot.lane.b32.xlu2 %v974_v14, %s857_s26  ;;  %486 = vrot.lane.b32.xlu1 %v974_v14, %s858_s10 }
  0xa6   : > { %484 = vrot.lane.b32.xlu0 %v972_v13, %s858_s10  ;;  %s299_s10 = scalar_lea.vmem [#allocation2], %s714_s22  ;;  %s812_s22 = scalar_lea.hbm %s1101_s8, 32 }
  0xad   : > { %468 = vrot.lane.b32.xlu2 %v972_v13, %s859_s12  ;;  %436 = vrot.lane.b32.xlu1 %v972_v13, %s857_s26  ;;  %s646_s26 = scalar_lea.hbm %s1101_s8, %s740_s23 }
  0xae   : > { %470 = vrot.lane.b32.xlu0 %v974_v14, %s859_s12  ;;  %s648_s12 = sshll.u32 %s299_s10, 4  ;;  %s649_s12 = int_to_ptr.vmem [resolvable:$true] %s648_s12 }
  0xb5   : > { %454 = vrot.lane.b32.xlu2 %v974_v14, %s860_s13  ;;  %452 = vrot.lane.b32.xlu1 %v972_v13, %s860_s13  ;;  %s650_s13 = sshll.u32 %s646_s26, 4  ;;  %s651_s13 = int_to_ptr.hbm [resolvable:$true] %s650_s13 }
  0xb6   : > { %388 = vrot.lane.b32.xlu0 %v972_v13, %s861_s17 }
  0xbd   : > { %420 = vrot.lane.b32.xlu2 %v972_v13, %s862_s18  ;;  %390 = vrot.lane.b32.xlu1 %v974_v14, %s861_s17  ;;  %s806_s17 = sshra.s32 %s651_s13, 4  ;;  %s807_s17 = int_to_ptr.hbm [resolvable:$true] %s806_s17 }
  0xbe   : > { %422 = vrot.lane.b32.xlu0 %v974_v14, %s862_s18  ;;  %s808_s18 = scalar_lea.hbm %s807_s17, 16  ;;  %p813_p0 = scmp.lt.s32.totalorder %s807_s17, %s1101_s8 }
  0xbf   : > { %p809_p11 = scmp.ne.s32.totalorder %s807_s17, %s808_s18  ;;  %p814_p1 = scmp.lt.s32.totalorder %s812_s22, %s808_s18 }
  0xc1   : > { %p810_p12 = pnand %p809_p11, %p948_p5  ;;  %p815_p2 = por %p814_p1, %p813_p0 }
  0xc3   : > { %p811_p13 = pneg %p810_p12 }
  0xc5   : > { %373 = vrot.lane.b32.xlu2 %v974_v14, %s863_s19  ;;  %371 = vrot.lane.b32.xlu1 %v972_v13, %s863_s19  ;;  %p816_p3 = pnand %p815_p2, %p811_p13 }
  0xc6   : > { %404 = vrot.lane.b32.xlu0 %v972_v13, %s864_s20 }
  0xcd   : > { %406 = vrot.lane.b32.xlu1 %v974_v14, %s864_s20  ;;  %543 = vperm.xlu2 %790, %v540_v62  }
  0xce   : > { %320 = vperm.xlu0 %789, %v312_v15   ;;  %v380_v15 = vld [vmem:[%s1100_s7] sm:$0x3] }
  0xff   : > { %v439_v18 = vpop.permute.xlu2 %438 }
 0x107   : > { %v469_v31 = vpop.permute.xlu2 %468 }
 0x10f   : > { %v455_v52 = vpop.permute.xlu2 %454 }
 0x117   : > { %v487_v22 = vpop.permute.xlu1 %486  ;;  %v421_v7 = vpop.permute.xlu2 %420 }
 0x118   : > { %v485_v23 = vpop.permute.xlu0 %484 }
 0x119   : > { %v489_v24 = vsel %vm488_vm2, %v485_v23, %v487_v22  ;;  %v490_v25 = vsel %vm488_vm2, %v487_v22, %v485_v23  ;;  %v724_v22 = vld [vmem:[%s1100_s7 + $0x4] sm:$0x3] }
 0x11a   : > { %v498_v26 = vmul.f32 %v494_v20, %v489_v24  ;;  %v499_v27 = vmul.f32 %v495_v21, %v490_v25  ;;  %v382_v24 = vperm.slane %v380_v15, 0  ;;  %v383_v25 = vperm.slane %v380_v15, 1 }
 0x11c   : > { %v537_v28 = vpack.c.bf16 %v498_v26, %v498_v26  ;;  %v538_v29 = vpack.c.bf16 %v499_v27, %v499_v27 }
 0x11e   : > { %v551_v32 = vsel %vm336_vm0, %v537_v28, 0  ;;  %v554_v33 = vsel %vm336_vm0, %v538_v29, 0 }
 0x11f   : > { %561 = vmatpush.bf16.msra.mxu2 %v551_v32  ;;  %574 = vmatpush.bf16.msra.mxu3 %v554_v33  ;;  %v437_v37 = vpop.permute.xlu1 %436  ;;  %v374_v23 = vpop.permute.xlu2 %373  ;;  %v414_v32 = vperm.slane %v724_v22, 0  ;;  %v415_v33 = vperm.slane %v724_v22, 1 }
 0x120   : > { %v441_v38 = vsel %vm440_vm3, %v437_v37, %v439_v18  ;;  %v442_v39 = vsel %vm440_vm3, %v439_v18, %v437_v37  ;;  %v471_v40 = vpop.permute.xlu0 %470 }
 0x121   : > { %v473_v43 = vsel %vm472_vm4, %v469_v31, %v471_v40  ;;  %v474_v44 = vsel %vm472_vm4, %v471_v40, %v469_v31  ;;  %v450_v46 = vmul.f32 %v446_v35, %v441_v38  ;;  %v451_v47 = vmul.f32 %v447_v36, %v442_v39 }
 0x122   : > { %v482_v48 = vmul.f32 %v478_v41, %v473_v43  ;;  %v483_v49 = vmul.f32 %v479_v42, %v474_v44 }
 0x123   : > { %v514_v53 = vrot.slane %v450_v46, 4  ;;  %v515_v54 = vrot.slane %v451_v47, 4 }
 0x124   : > { %v520_v58 = vrot.slane %v482_v48, 4  ;;  %v521_v59 = vrot.slane %v483_v49, 4 }
 0x125   : > { %v529_v0 = vsel %vm524_vm6, %v972_v13, %v514_v53  ;;  %v530_v2 = vsel %vm524_vm6, %v974_v14, %v515_v54  ;;  %v399_v13 = vperm.slane %v723_v8, 1  ;;  %v430_v14 = vperm.slane %v725_v9, 0 }
 0x127   : > { %v453_v55 = vpop.permute.xlu1 %452  ;;  %v544_v53 = vpop.permute.xlu2 %543 }
 0x128   : > { %v457_v56 = vsel %vm456_vm5, %v453_v55, %v455_v52  ;;  %v458_v57 = vsel %vm456_vm5, %v455_v52, %v453_v55  ;;  %v389_v63 = vpop.permute.xlu0 %388  ;;  %v587_v52 = vld [vmem:[%s1099_s6] sm:$0xff] }
 0x129   : > { %v466_v60 = vmul.f32 %v462_v50, %v457_v56  ;;  %v467_v61 = vmul.f32 %v463_v51, %v458_v57  ;;  %590 = vperm.xlu1 %791, %v587_v52  }
 0x12b   : > { %v531_v1 = vsel %vm524_vm6, %v466_v60, %v520_v58  ;;  %v532_v3 = vsel %vm524_vm6, %v467_v61, %v521_v59 }
 0x12c   : > { %v535_v4 = vpack.c.bf16 %v531_v1, %v529_v0  ;;  %v536_v5 = vpack.c.bf16 %v532_v3, %v530_v2  ;;  %v584_v2 = vld [vmem:[%s1098_s5] sm:$0xf]  ;;  %v352_v3 = vpop.f32.mrf.mxu0 }
 0x12e   : > { %562 = vmatpush.bf16.msra.mxu2 %v535_v4  ;;  %575 = vmatpush.bf16.msra.mxu3 %v536_v5  ;;  %v366_v4 = vpop.f32.mrf.mxu1 }
 0x12f   : > { %v391_v6 = vpop.permute.xlu1 %390 }
 0x130   : > { %v423_v10 = vpop.permute.xlu0 %422  ;;  %v393_v16 = vsel %vm392_vm7, %v389_v63, %v391_v6  ;;  %v394_v18 = vsel %vm392_vm7, %v391_v6, %v389_v63 }
 0x131   : > { %v425_v20 = vsel %vm424_vm8, %v421_v7, %v423_v10  ;;  %v426_v21 = vsel %vm424_vm8, %v423_v10, %v421_v7  ;;  %v402_v26 = vmul.f32 %v398_v12, %v394_v18  ;;  %v403_v27 = vmul.f32 %v399_v13, %v393_v16 }
 0x132   : > { %v434_v30 = vmul.f32 %v430_v14, %v426_v21  ;;  %v435_v31 = vmul.f32 %v431_v19, %v425_v20 }
 0x133   : > { %v502_v38 = vrot.slane %v402_v26, 4  ;;  %v503_v39 = vrot.slane %v403_v27, 4 }
 0x134   : > { %v508_v42 = vrot.slane %v434_v30, 4  ;;  %v509_v43 = vrot.slane %v435_v31, 4 }
 0x137   : > { %v372_v11 = vpop.permute.xlu1 %371 }
 0x138   : > { %v378_v28 = vsel %vm377_vm9, %v372_v11, %v374_v23  ;;  %v379_v29 = vsel %vm377_vm9, %v374_v23, %v372_v11  ;;  %v405_v36 = vpop.permute.xlu0 %404 }
 0x139   : > { %v386_v34 = vmul.f32 %v382_v24, %v379_v29  ;;  %v387_v35 = vmul.f32 %v383_v25, %v378_v28 }
 0x13b   : > { %v525_v46 = vsel %vm524_vm6, %v386_v34, %v502_v38  ;;  %v526_v48 = vsel %vm524_vm6, %v387_v35, %v503_v39 }
 0x13f   : > { %v407_v37 = vpop.permute.xlu1 %406 }
 0x140   : > { %v409_v40 = vsel %vm408_vm10, %v405_v36, %v407_v37  ;;  %v410_v41 = vsel %vm408_vm10, %v407_v37, %v405_v36  ;;  %v321_v5 = vpop.permute.xlu0 %320 }
 0x141   : > { %v418_v44 = vmul.f32 %v414_v32, %v410_v41  ;;  %v419_v45 = vmul.f32 %v415_v33, %v409_v40  ;;  %v353_v9 = vadd.f32 %v352_v3, %v321_v5  ;;  %v367_v10 = vadd.f32 %v366_v4, %v321_v5 }
 0x143   : > { %v527_v47 = vsel %vm524_vm6, %v418_v44, %v508_v42  ;;  %v528_v49 = vsel %vm524_vm6, %v419_v45, %v509_v43 }
 0x144   : > { %v533_v50 = vpack.c.bf16 %v527_v47, %v525_v46  ;;  %v534_v51 = vpack.c.bf16 %v528_v49, %v526_v48 }
 0x146   : > { %563 = vmatpush.bf16.msra.mxu2 %v533_v50  ;;  %576 = vmatpush.bf16.msra.mxu3 %v534_v51 }
 0x149   : > { %730 = vmatmul.msk.bf16.vlgmr.msra.gmra.mxu2 %vm546_vm11, %v539_v17  ;;  %731 = vmatmul.msk.bf16.vlgmr.msra.gmra.mxu3 %vm546_vm11, %v539_v17 }
 0x19b   : > { %v591_v6 = vpop.permute.xlu1 %590 }
 0x1cc   : > { %v565_v54 = vpop.f32.mrf.mxu2  ;;  %v578_v55 = vpop.f32.mrf.mxu3 }
 0x1cd   : > { %v566_v56 = vadd.f32 %v565_v54, %v544_v53  ;;  %v579_v57 = vadd.f32 %v578_v55, %v544_v53 }
 0x1cf   : > { %v582_v58 = vmax.f32 %v566_v56, 0.0  ;;  %v583_v59 = vmax.f32 %v579_v57, 0.0 }
 0x1d1   : > { %v585_v60 = vpack.c.bf16 %v582_v58, %v582_v58  ;;  %v586_v61 = vpack.c.bf16 %v583_v59, %v583_v59 }
 0x1d3   : > { %v597_v62 = vsel %vm336_vm0, %v585_v60, 0  ;;  %v600_v63 = vsel %vm336_vm0, %v586_v61, 0 }
 0x1d4   : > { %v567_v0 = vpop.f32.mrf.mxu2  ;;  %v580_v1 = vpop.f32.mrf.mxu3  ;;  %609 = vmatpush.bf16.msrb.mxu0 %v597_v62  ;;  %622 = vmatpush.bf16.msrb.mxu1 %v600_v63 }
 0x1d7   : > { %732 = vmatmul.msk.bf16.vlgmr.msrb.gmra.mxu0 %vm332_vm1, %v584_v2  ;;  %733 = vmatmul.msk.bf16.vlgmr.msrb.gmra.mxu1 %vm332_vm1, %v584_v2 }
 0x254   : > { %v611_v7 = vpop.f32.mrf.mxu0  ;;  %v624_v8 = vpop.f32.mrf.mxu1 }
 0x255   : > { %v612_v11 = vadd.f32 %v611_v7, %v591_v6  ;;  %v625_v12 = vadd.f32 %v624_v8, %v591_v6 }
 0x257   : > { %v628_v13 = vadd.f32 %v612_v11, %v353_v9  ;;  %v629_v14 = vadd.f32 %v625_v12, %v367_v10 }
 0x259   : > { %v630_v15 = vmax.f32 %v628_v13, 0.0  ;;  %v631_v16 = vmax.f32 %v629_v14, 0.0 }
 0x25b   : > { %632 = vst [vmem:[%s299_s10] sm:$0xff] %v630_v15 }
 0x25c   : > { %633 = vst [vmem:[%s299_s10 + $0x8] sm:$0xff] %v631_v16  ;;  %v613_v18 = vpop.f32.mrf.mxu0  ;;  %v626_v19 = vpop.f32.mrf.mxu1 }
 0x25d   : > { %819 = shalt.err (!%p816_p3)
}
 0x25e   : > { %741 = dma.vmem_to_hbm [thread:$0]  (%p948_p5), %s649_s12, 256, %s651_s13, %s635_s9  }
 0x25f PF: > { %p747_p4 = scmp.ge.s32.totalorder %s854_s30, 2  ;;  %s662_s21 = sand.u32 1, %s842_s27  }
 0x260   : > { %s663_s25 = scalar_lea.sflag [#allocation3], %s662_s21 }
 0x261   : > { %p744_p7 = pnand %p747_p4, %p952_p6 }
 0x263   : > { %p745_p8 = pneg %p744_p7 }
 0x265   : > { %837 = dma.done.wait (%p745_p8), %s663_s25, 256  }
 0x266   : > { %839 = vsyncadd (%p745_p8), %s663_s25, 4294967040  ;;  %p18_p9 = scmp.ge.s32.totalorder %s935_s11, 4   ;;  %s1104_s27 = smov %s846_s28 }
 0x267   : > { %s1105_s28 = smov %s850_s29  ;;  %s1106_s29 = smov %s946_s14 }
 0x268   : > { %s1107_s30 = smov %s935_s11  ;;  %20 = sbr.rel (!%p18_p9) target bundleno = 3 (0x3), region = 94 }
 0x26d   :  { %669 = vsyncpa [#allocation3], 1 }
 0x26e   :  { %671 = vsyncpa [#allocation3 + $0x1], 1 }

</bundles_post_ra>
